<compile_context>
chip_gen: v7x
topology: tpu7x:2x2x1
jax: 0.10.0
libtpu: 0.0.40
codegen_flags: <defaults>
</compile_context>

<pallas_src>
import jax
import jax.numpy as jnp
from jax.experimental import pallas as pl
from jax.experimental.pallas import tpu as pltpu


# ----------------------------------------------------------------------------
# Small helpers
# ----------------------------------------------------------------------------
def _round_up(x, m):
    return ((x + m - 1) // m) * m


def _row_plan(n):
    """MXU-aligned row block + padded row count for the projections."""
    for rb in (512, 256, 128):
        if n % rb == 0:
            return rb, n
    if n <= 512:
        rb = max(8, _round_up(n, 8))
        return rb, rb
    return 512, _round_up(n, 512)


def _col_block(width, target=512):
    """Column tile: full width if small, else a multiple-of-128 divisor."""
    if width <= target:
        return width
    for tn in range(target - target % 128, 127, -128):
        if width % tn == 0:
            return tn
    return width


# ----------------------------------------------------------------------------
# Projection kernel (x @ W + b for several inputs / several outputs)
# ----------------------------------------------------------------------------
def _make_proj_kernel(n_in, n_out):
    def kernel(*refs):
        in_refs = refs[:n_in]
        w_refs = refs[n_in:n_in + n_in * n_out]
        b_refs = refs[n_in + n_in * n_out:n_in + n_in * n_out + n_out]
        out_refs = refs[n_in + n_in * n_out + n_out:]
        xs = [r[...] for r in in_refs]                       # reused across outputs
        for o in range(n_out):
            acc = b_refs[o][...].astype(jnp.float32)         # (1, tn) broadcasts
            for i in range(n_in):
                acc = acc + jnp.dot(xs[i], w_refs[o * n_in + i][...],
                                    preferred_element_type=jnp.float32)
            out_refs[o][...] = acc.astype(out_refs[o].dtype)
    return kernel


def projection(inputs, weights, biases, out_dtypes):
    """Row/column tiled projection.

    inputs : list of (N, K_i) arrays (bf16).
    weights: weights[o][i] of shape (K_i, W) (bf16).
    biases : list of (1, W) f32 (one per output).
    Returns a tuple of (N, W) arrays, one per output, in `out_dtypes`.
    """
    n_in, n_out = len(inputs), len(biases)
    N = inputs[0].shape[0]
    width = biases[0].shape[1]
    assert all(b.shape[1] == width for b in biases)

    rb, n_pad = _row_plan(N)
    tn = _col_block(width)
    if n_pad != N:
        inputs = [jnp.pad(a, ((0, n_pad - N), (0, 0))) for a in inputs]
    grid = (n_pad // rb, width // tn)

    in_specs = []
    for a in inputs:
        in_specs.append(pl.BlockSpec((rb, a.shape[1]), lambda r, j: (r, 0)))
    flat_w = []
    for o in range(n_out):
        for i in range(n_in):
            w = weights[o][i]
            flat_w.append(w)
            in_specs.append(pl.BlockSpec((w.shape[0], tn), lambda r, j: (0, j)))
    for _ in biases:
        in_specs.append(pl.BlockSpec((1, tn), lambda r, j: (0, j)))

    out_shape = tuple(jax.ShapeDtypeStruct((n_pad, width), dt) for dt in out_dtypes)
    out_specs = [pl.BlockSpec((rb, tn), lambda r, j: (r, j)) for _ in range(n_out)]

    outs = pl.pallas_call(
        _make_proj_kernel(n_in, n_out),
        out_shape=out_shape,
        grid_spec=pltpu.PrefetchScalarGridSpec(
            num_scalar_prefetch=0,
            grid=grid,
            in_specs=in_specs,
            out_specs=out_specs,
        ),
        compiler_params=pltpu.CompilerParams(
            dimension_semantics=("parallel", "parallel")),
    )(*inputs, *flat_w, *biases)

    if not isinstance(outs, (tuple, list)):
        outs = (outs,)
    if n_pad != N:
        outs = tuple(o[:N] for o in outs)
    return tuple(outs)


# ----------------------------------------------------------------------------
# Fused bidirectional LSTM recurrence
# ----------------------------------------------------------------------------
def _make_bilstm_kernel(*, H, tc, nc, T_real, fuse):
    """Build the recurrence kernel.  Gate columns are packed [i|f|o|g] with the
    i,f,o pre-activations already scaled by 0.5 (sigmoid-via-tanh trick)."""
    need_mask = (nc * tc) != T_real
    H3, H4 = 3 * H, 4 * H

    def _cell(z, c):
        t = jnp.tanh(z)                        # one EUP pass over all 4H cols
        sig = 0.5 + 0.5 * t[:, :H3]            # i, f, o  (VPU fixup)
        c_new = sig[:, H:2 * H] * c + sig[:, :H] * t[:, H3:]
        h_new = sig[:, 2 * H:] * jnp.tanh(c_new)
        return h_new, c_new

    def _body(recur, gf_ref, gb_ref, of_ref, ob_ref, hf_sc, cf_sc, hb_sc, cb_sc):
        c_idx = pl.program_id(0)

        @pl.when(c_idx == 0)
        def _():
            for sc in (hf_sc, cf_sc, hb_sc, cb_sc):
                sc[...] = jnp.zeros_like(sc)

        def step(s, carry):
            h_f, c_f, h_b, c_b = carry
            sb = tc - 1 - s
            z_f, z_b = recur(h_f, h_b)                         # h @ W_hh (MXU)
            z_f = z_f + gf_ref[s].astype(jnp.float32)          # bf16 gates -> f32
            z_b = z_b + gb_ref[sb].astype(jnp.float32)
            h_f_new, c_f_new = _cell(z_f, c_f)
            h_b_new, c_b_new = _cell(z_b, c_b)
            if need_mask:
                # padded tail steps are processed FIRST by the backward dir;
                # keep its state untouched there (outputs are discarded).
                valid = ((nc - 1 - c_idx) * tc + sb) < T_real
                h_b_new = jnp.where(valid, h_b_new, h_b)
                c_b_new = jnp.where(valid, c_b_new, c_b)
            of_ref[s] = h_f_new.astype(of_ref.dtype)
            ob_ref[sb] = h_b_new.astype(ob_ref.dtype)
            return (h_f_new, c_f_new, h_b_new, c_b_new)

        carry0 = (hf_sc[...], cf_sc[...], hb_sc[...], cb_sc[...])
        h_f, c_f, h_b, c_b = jax.lax.fori_loop(0, tc, step, carry0, unroll=True)
        hf_sc[...] = h_f
        cf_sc[...] = c_f
        hb_sc[...] = h_b
        cb_sc[...] = c_b

    if fuse:
        # Single block-diagonal matmul per step: [h_f|h_b] @ (2H, 8H).
        def kernel(gf_ref, gb_ref, wcat_ref, of_ref, ob_ref,
                   hf_sc, cf_sc, hb_sc, cb_sc):
            def recur(h_f, h_b):
                h_cat = jnp.concatenate([h_f, h_b], axis=-1).astype(wcat_ref.dtype)
                rec = jnp.dot(h_cat, wcat_ref[...],
                              preferred_element_type=jnp.float32)   # (B, 8H)
                return rec[:, :H4], rec[:, H4:]
            _body(recur, gf_ref, gb_ref, of_ref, ob_ref, hf_sc, cf_sc, hb_sc, cb_sc)
    else:
        def kernel(gf_ref, gb_ref, whf_ref, whb_ref, of_ref, ob_ref,
                   hf_sc, cf_sc, hb_sc, cb_sc):
            def recur(h_f, h_b):
                z_f = jnp.dot(h_f.astype(whf_ref.dtype), whf_ref[...],
                              preferred_element_type=jnp.float32)
                z_b = jnp.dot(h_b.astype(whb_ref.dtype), whb_ref[...],
                              preferred_element_type=jnp.float32)
                return z_f, z_b
            _body(recur, gf_ref, gb_ref, of_ref, ob_ref, hf_sc, cf_sc, hb_sc, cb_sc)

    return kernel


def bilstm_layer(gf, gb, whh_f, whh_b, *, H, T_real, tc,
                 out_dtype=jnp.bfloat16, fuse=None):
    """Fused bidirectional recurrence.

    gf, gb: (T_pad, B, 4H) bf16 pre-computed input gates, per direction,
            packed [i|f|o|g] with i,f,o columns pre-scaled by 0.5.
    Returns (h_fwd, h_bwd), each (T_pad, B, H) in `out_dtype`.
    """
    T_pad, B, G4 = gf.shape
    assert G4 == 4 * H and T_pad % tc == 0
    nc = T_pad // tc
    if fuse is None:
        fuse = H <= 128          # small H: per-step matmul is latency-bound

    kernel = _make_bilstm_kernel(H=H, tc=tc, nc=nc, T_real=T_real, fuse=fuse)

    if fuse:
        wcat = jnp.zeros((2 * H, 8 * H), whh_f.dtype)
        wcat = wcat.at[:H, :4 * H].set(whh_f)
        wcat = wcat.at[H:, 4 * H:].set(whh_b)
        w_inputs = (wcat,)
        w_specs = [pl.BlockSpec((2 * H, 8 * H), lambda c: (0, 0))]
    else:
        w_inputs = (whh_f, whh_b)
        w_specs = [pl.BlockSpec((H, 4 * H), lambda c: (0, 0)),
                   pl.BlockSpec((H, 4 * H), lambda c: (0, 0))]

    out_struct = jax.ShapeDtypeStruct((T_pad, B, H), out_dtype)
    return pl.pallas_call(
        kernel,
        out_shape=(out_struct, out_struct),
        grid_spec=pltpu.PrefetchScalarGridSpec(
            num_scalar_prefetch=0,
            grid=(nc,),
            in_specs=[
                pl.BlockSpec((tc, B, 4 * H), lambda c: (c, 0, 0)),           # fwd gates
                pl.BlockSpec((tc, B, 4 * H), lambda c: (nc - 1 - c, 0, 0)),  # bwd gates
            ] + w_specs,
            out_specs=[
                pl.BlockSpec((tc, B, H), lambda c: (c, 0, 0)),
                pl.BlockSpec((tc, B, H), lambda c: (nc - 1 - c, 0, 0)),
            ],
            scratch_shapes=[pltpu.VMEM((B, H), jnp.float32)] * 4,
        ),
        compiler_params=pltpu.CompilerParams(
            dimension_semantics=("arbitrary",)),
    )(gf, gb, *w_inputs)


# ----------------------------------------------------------------------------
# Parameter repacking for the kernels
# ----------------------------------------------------------------------------
def prepare_kernel_params(params, *, num_layers=2, compute_dtype=jnp.bfloat16):
    """Repack PyTorch-style params (gate order i,f,g,o) into kernel form:
    gate order [i|f|o|g], i,f,o columns pre-scaled by 0.5 (so sigmoid(x) =
    0.5 + 0.5*tanh(pre-scaled)), matmul weights in bf16, biases f32."""
    H = params["l0_fwd"][1].shape[0]

    def _repack(w):
        i, f, g, o = (w[..., :H], w[..., H:2 * H],
                      w[..., 2 * H:3 * H], w[..., 3 * H:])
        return jnp.concatenate([0.5 * i, 0.5 * f, 0.5 * o, g], axis=-1)

    kp = {}
    for layer in range(num_layers):
        w_ih_f, w_hh_f, b_f = params[f"l{layer}_fwd"]
        w_ih_b, w_hh_b, b_b = params[f"l{layer}_bwd"]
        kp[f"l{layer}_wih"] = (_repack(w_ih_f).astype(compute_dtype),
                               _repack(w_ih_b).astype(compute_dtype))
        kp[f"l{layer}_bias"] = (_repack(b_f).astype(jnp.float32),
                                _repack(b_b).astype(jnp.float32))
        kp[f"l{layer}_whh"] = (_repack(w_hh_f).astype(compute_dtype),
                               _repack(w_hh_b).astype(compute_dtype))
    w_lin, b_lin = params["linear"]
    kp["lin"] = (w_lin[:H].astype(compute_dtype),
                 w_lin[H:].astype(compute_dtype),
                 b_lin.astype(jnp.float32))
    return kp, H


# ----------------------------------------------------------------------------
# BLSTM forward (wrapper / glue)
# ----------------------------------------------------------------------------
def blstm_forward(x, params, *, num_layers=2, bi=True,
                  compute_dtype=jnp.bfloat16, time_chunk=None,
                  vmem_budget_bytes=8 << 20):
    """x: (B, C, T) -> (B, C, T), matching BLSTM.forward with hidden=None."""
    # TODO(synk): unidirectional (bi=False) path is not wired into the fused
    # bidirectional kernel; the reference module default (bi=True) is covered.
    assert bi, "fused kernel implements the bidirectional (bi=True) path"
    B, C, T = x.shape
    kp, H = prepare_kernel_params(params, num_layers=num_layers,
                                  compute_dtype=compute_dtype)

    # VMEM-budget-derived time chunk: bf16 gates + bf16 outputs, 2 directions,
    # double-buffered pipeline; capped at 32 (inner loop is fully unrolled).
    bytes_per_step = 2 * 2 * (B * 4 * H * 2) + 2 * 2 * (B * H * 2)
    if time_chunk is not None:
        tc = time_chunk
    else:
        tc = max(1, min(32, vmem_budget_bytes // bytes_per_step, T))
    T_pad = _round_up(T, tc)

    x_tbc = jnp.transpose(x, (2, 0, 1)).astype(compute_dtype)     # (T, B, C)
    if T_pad != T:
        x_tbc = jnp.pad(x_tbc, ((0, T_pad - T), (0, 0), (0, 0)))
    N = T_pad * B

    h_f = h_b = None
    for layer in range(num_layers):
        w_f, w_b = kp[f"l{layer}_wih"]
        b_f, b_b = kp[f"l{layer}_bias"]
        if layer == 0:
            gf, gb = projection([x_tbc.reshape(N, C)],
                                [[w_f], [w_b]], [b_f, b_b],
                                [compute_dtype, compute_dtype])
        else:
            # layer input is [h_fwd | h_bwd]; consume the halves directly
            # (no materialized concat), split each weight along its rows.
            gf, gb = projection([h_f.reshape(N, H), h_b.reshape(N, H)],
                                [[w_f[:H], w_f[H:]], [w_b[:H], w_b[H:]]],
                                [b_f, b_b], [compute_dtype, compute_dtype])
        whh_f, whh_b = kp[f"l{layer}_whh"]
        h_f, h_b = bilstm_layer(gf.reshape(T_pad, B, 4 * H),
                                gb.reshape(T_pad, B, 4 * H),
                                whh_f, whh_b, H=H, T_real=T, tc=tc,
                                out_dtype=compute_dtype)

    w1, w2, bl = kp["lin"]
    (out,) = projection([h_f.reshape(N, H), h_b.reshape(N, H)],
                        [[w1, w2]], [bl], [jnp.float32])           # (N, dim) f32
    out = out.reshape(T_pad, B, -1)[:T]
    return jnp.transpose(out, (1, 2, 0))                           # (B, C, T)


# ----------------------------------------------------------------------------
# Pure-JAX reference (f32, PyTorch gate order i,f,g,o) for correctness check
# ----------------------------------------------------------------------------
def _ref_lstm_layer(x, w_ih, w_hh, b, reverse):
    T, B, _ = x.shape
    H = w_hh.shape[0]
    xs = x[::-1] if reverse else x

    def step(carry, x_t):
        h, c = carry
        g = x_t @ w_ih + h @ w_hh + b
        i = jax.nn.sigmoid(g[:, :H])
        f = jax.nn.sigmoid(g[:, H:2 * H])
        gg = jnp.tanh(g[:, 2 * H:3 * H])
        o = jax.nn.sigmoid(g[:, 3 * H:])
        c = f * c + i * gg
        h = o * jnp.tanh(c)
        return (h, c), h

    init = (jnp.zeros((B, H), jnp.float32), jnp.zeros((B, H), jnp.float32))
    _, hs = jax.lax.scan(step, init, xs)
    return hs[::-1] if reverse else hs


def _ref_forward(x, params, *, num_layers=2, bi=True):
    h = jnp.transpose(x, (2, 0, 1)).astype(jnp.float32)
    for layer in range(num_layers):
        fwd = _ref_lstm_layer(h, *params[f"l{layer}_fwd"], reverse=False)
        if bi:
            bwd = _ref_lstm_layer(h, *params[f"l{layer}_bwd"], reverse=True)
            h = jnp.concatenate([fwd, bwd], axis=-1)
        else:
            h = fwd
    if bi:
        w_lin, b_lin = params["linear"]
        h = h @ w_lin + b_lin
    return jnp.transpose(h, (1, 2, 0))


# ----------------------------------------------------------------------------
# Deterministic parameter init (PyTorch-style uniform(-1/sqrt(H), 1/sqrt(H)))
# ----------------------------------------------------------------------------
def init_params(key, dim, num_layers=2, bi=True):
    k = 1.0 / jnp.sqrt(jnp.float32(dim))
    params = {}
    directions = ["fwd", "bwd"] if bi else ["fwd"]
    for layer in range(num_layers):
        in_size = dim if layer == 0 else dim * (2 if bi else 1)
        for d in directions:
            key, k1, k2, k3, k4 = jax.random.split(key, 5)
            w_ih = jax.random.uniform(k1, (in_size, 4 * dim), jnp.float32, -k, k)
            w_hh = jax.random.uniform(k2, (dim, 4 * dim), jnp.float32, -k, k)
            b_ih = jax.random.uniform(k3, (4 * dim,), jnp.float32, -k, k)
            b_hh = jax.random.uniform(k4, (4 * dim,), jnp.float32, -k, k)
            params[f"l{layer}_{d}"] = (w_ih, w_hh, (b_ih + b_hh)[None, :])
    if bi:
        key, k1, k2 = jax.random.split(key, 3)
        kl = 1.0 / jnp.sqrt(jnp.float32(2 * dim))
        w_lin = jax.random.uniform(k1, (2 * dim, dim), jnp.float32, -kl, kl)
        b_lin = jax.random.uniform(k2, (dim,), jnp.float32, -kl, kl)
        params["linear"] = (w_lin, b_lin[None, :])
    return params


# ----------------------------------------------------------------------------
if __name__ == "__main__":
    B, DIM, T = 2, 32, 8
    key = jax.random.PRNGKey(0)
    key, kx = jax.random.split(key)
    x = jax.random.normal(kx, (B, DIM, T), dtype=jnp.float32)

    params = init_params(key, DIM, num_layers=2, bi=True)

    out = jax.block_until_ready(blstm_forward(x, params))
    assert out.shape == (B, DIM, T), out.shape

    ref = jax.block_until_ready(_ref_forward(x, params))
    max_err = float(jnp.max(jnp.abs(out - ref)))
    # bf16 matmul operands + bf16-stored gates, f32 accumulation, vs. pure-f32
    # reference; error compounds mildly with T (small here).
    assert jnp.allclose(out, ref, atol=3e-2, rtol=3e-2), max_err

    print("KERNEL_OK")
</pallas_src>

<mosaic_0001>
module attributes {stable_mosaic.version = 11 : i64} {
  func.func @kernel(%arg0: i32, %arg1: i32, %arg2: memref<16x32xbf16, #tpu.memory_space<vmem>>, %arg3: memref<32x128xbf16, #tpu.memory_space<vmem>>, %arg4: memref<32x128xbf16, #tpu.memory_space<vmem>>, %arg5: memref<1x128xf32, #tpu.memory_space<vmem>>, %arg6: memref<1x128xf32, #tpu.memory_space<vmem>>, %arg7: memref<16x128xbf16, #tpu.memory_space<vmem>>, %arg8: memref<16x128xbf16, #tpu.memory_space<vmem>>) attributes {dimension_semantics = [#tpu.dimension_semantics<parallel>, #tpu.dimension_semantics<parallel>], iteration_bounds = array<i64: 1, 1>, scalar_prefetch = 0 : i64, scratch_operands = 0 : i64, tpu.core_type = #tpu.core_type<tc>, window_params = [{transform_indices = @transform_0, window_bounds = array<i64: 16, 32>}, {transform_indices = @transform_1, window_bounds = array<i64: 32, 128>}, {transform_indices = @transform_2, window_bounds = array<i64: 32, 128>}, {transform_indices = @transform_3, window_bounds = array<i64: 1, 128>}, {transform_indices = @transform_4, window_bounds = array<i64: 1, 128>}, {transform_indices = @transform_5, window_bounds = array<i64: 16, 128>}, {transform_indices = @transform_6, window_bounds = array<i64: 16, 128>}]} {
    %c0 = arith.constant 0 : index
    %c0_0 = arith.constant 0 : index
    %0 = vector.load %arg2[%c0, %c0_0] : memref<16x32xbf16, #tpu.memory_space<vmem>>, vector<16x32xbf16>
    %c0_1 = arith.constant 0 : index
    %c0_2 = arith.constant 0 : index
    %1 = vector.load %arg5[%c0_1, %c0_2] : memref<1x128xf32, #tpu.memory_space<vmem>>, vector<1x128xf32>
    %c0_3 = arith.constant 0 : index
    %c0_4 = arith.constant 0 : index
    %2 = vector.load %arg3[%c0_3, %c0_4] : memref<32x128xbf16, #tpu.memory_space<vmem>>, vector<32x128xbf16>
    %cst = arith.constant dense<0.000000e+00> : vector<16x128xf32>
    %3 = tpu.matmul %0, %2, %cst {dimension_numbers = #tpu.dot_dimension_numbers<[1], [0], [0], [1], [0, 0, 1, 1], [], []>} : vector<16x32xbf16>, vector<32x128xbf16>, vector<16x128xf32> -> vector<16x128xf32>
    %4 = vector.broadcast %1 : vector<1x128xf32> to vector<16x128xf32>
    %5 = arith.addf %4, %3 : vector<16x128xf32>
    %6 = arith.truncf %5 : vector<16x128xf32> to vector<16x128xbf16>
    %c0_5 = arith.constant 0 : index
    %c0_6 = arith.constant 0 : index
    %7 = vector.load %arg7[%c0_5, %c0_6] : memref<16x128xbf16, #tpu.memory_space<vmem>>, vector<16x128xbf16>
    tpu.vector_store %arg7[%c0_5, %c0_6], %6 {strides = array<i32>} : memref<16x128xbf16, #tpu.memory_space<vmem>>, vector<16x128xbf16>,
    %c0_7 = arith.constant 0 : index
    %c0_8 = arith.constant 0 : index
    %8 = vector.load %arg6[%c0_7, %c0_8] : memref<1x128xf32, #tpu.memory_space<vmem>>, vector<1x128xf32>
    %c0_9 = arith.constant 0 : index
    %c0_10 = arith.constant 0 : index
    %9 = vector.load %arg4[%c0_9, %c0_10] : memref<32x128xbf16, #tpu.memory_space<vmem>>, vector<32x128xbf16>
    %cst_11 = arith.constant dense<0.000000e+00> : vector<16x128xf32>
    %10 = tpu.matmul %0, %9, %cst_11 {dimension_numbers = #tpu.dot_dimension_numbers<[1], [0], [0], [1], [0, 0, 1, 1], [], []>} : vector<16x32xbf16>, vector<32x128xbf16>, vector<16x128xf32> -> vector<16x128xf32>
    %11 = vector.broadcast %8 : vector<1x128xf32> to vector<16x128xf32>
    %12 = arith.addf %11, %10 : vector<16x128xf32>
    %13 = arith.truncf %12 : vector<16x128xf32> to vector<16x128xbf16>
    %c0_12 = arith.constant 0 : index
    %c0_13 = arith.constant 0 : index
    %14 = vector.load %arg8[%c0_12, %c0_13] : memref<16x128xbf16, #tpu.memory_space<vmem>>, vector<16x128xbf16>
    tpu.vector_store %arg8[%c0_12, %c0_13], %13 {strides = array<i32>} : memref<16x128xbf16, #tpu.memory_space<vmem>>, vector<16x128xbf16>,
    return
  }
  func.func @transform_0(%arg0: i32, %arg1: i32) -> (i32, i32) {
    %c0_i32 = arith.constant 0 : i32
    %c0_i32_0 = arith.constant 0 : i32
    return %arg0, %c0_i32 : i32, i32
  }
  func.func @transform_1(%arg0: i32, %arg1: i32) -> (i32, i32) {
    %c0_i32 = arith.constant 0 : i32
    %c0_i32_0 = arith.constant 0 : i32
    return %c0_i32, %arg1 : i32, i32
  }
  func.func @transform_2(%arg0: i32, %arg1: i32) -> (i32, i32) {
    %c0_i32 = arith.constant 0 : i32
    %c0_i32_0 = arith.constant 0 : i32
    return %c0_i32, %arg1 : i32, i32
  }
  func.func @transform_3(%arg0: i32, %arg1: i32) -> (i32, i32) {
    %c0_i32 = arith.constant 0 : i32
    %c0_i32_0 = arith.constant 0 : i32
    return %c0_i32, %arg1 : i32, i32
  }
  func.func @transform_4(%arg0: i32, %arg1: i32) -> (i32, i32) {
    %c0_i32 = arith.constant 0 : i32
    %c0_i32_0 = arith.constant 0 : i32
    return %c0_i32, %arg1 : i32, i32
  }
  func.func @transform_5(%arg0: i32, %arg1: i32) -> (i32, i32) {
    %c0_i32 = arith.constant 0 : i32
    return %arg0, %arg1 : i32, i32
  }
  func.func @transform_6(%arg0: i32, %arg1: i32) -> (i32, i32) {
    %c0_i32 = arith.constant 0 : i32
    return %arg0, %arg1 : i32, i32
  }
}

</mosaic_0001>

<bundles_post_ra>
// kernel: tpu_custom_call.1
= control target key start
LH: loop header
LB: loop body
LE: loop exit
PB: predicated region body
PF: predicated region fallthrough
CT: control target
= control target key end

     0   :  { %12 = vsyncpa [#allocation3], 0  ;;  %s583_s0 = inlined_call_operand.hbm [shape: bf16[16,32], index: 0, kind: input, shape index: {}]   ;;  %s584_s1 = inlined_call_operand.hbm [shape: bf16[32,128], index: 1, kind: input, shape index: {}]   ;;  %s585_s2 = inlined_call_operand.hbm [shape: bf16[32,128], index: 2, kind: input, shape index: {}]   ;;  %s586_s3 = inlined_call_operand.vmem [shape: f32[1,128], index: 3, kind: input, shape index: {}]   ;;  %s587_s4 = inlined_call_operand.vmem [shape: f32[1,128], index: 4, kind: input, shape index: {}]   ;;  %s588_s5 = inlined_call_operand.hbm [shape: bf16[16,128], index: 5, kind: output, shape index: {0}]   ;;  %s589_s6 = inlined_call_operand.hbm [shape: bf16[16,128], index: 6, kind: output, shape index: {1}]  }
   0x1   :  { %13 = vsyncpa [#allocation6], 0 }
   0x2   :  { %14 = vsyncpa [#allocation4], 0 }
   0x3   :  { %15 = vsyncpa [#allocation10], 0  ;;  %s444_s21 = smov [#allocation5]   ;;  %s445_s23 = smov [#allocation2]  }
   0x4   :  { %s33_s22 = sshll.u32 %s444_s21, 4  ;;  %s21_s24 = sshll.u32 %s445_s23, 4  ;;  %s34_s22 = int_to_ptr.vmem [resolvable:$true] %s33_s22  ;;  %s488_s24 = int_to_ptr.vmem [resolvable:$true] %s21_s24 }
   0x5   :  { %s326_s27 = scalar_lea.hbm %s584_s1, 256 }
   0x6   :  { %p327_p0 = scmp.ne.s32.totalorder %s584_s1, %s326_s27  ;;  %p330_p1 = scmp.lt.u32.totalorder %s326_s27, %s584_s1 }
   0x8   :  { %p332_p2 = pnand %p330_p1, %p327_p0 }
   0xa   :  { %335 = shalt.err (!%p332_p2)
}
   0xb   :  { %s336_s8 = scalar_lea.vmem %s34_s22, 256  ;;  %p341_p4 = scmp.lt.s32.totalorder %s34_s22, %s34_s22 }
   0xc   :  { %p337_p3 = scmp.ne.s32.totalorder %s34_s22, %s336_s8  ;;  %p342_p5 = scmp.lt.s32.totalorder %s336_s8, %s336_s8 }
   0xe   :  { %p343_p6 = por %p342_p5, %p341_p4 }
  0x10   :  { %p344_p7 = pnand %p343_p6, %p337_p3 }
  0x12   :  { %347 = shalt.err (!%p344_p7)
}
  0x13   :  { %s446_s9 = smov 64   ;;  %s447_s10 = smov 4  }
  0x14   :  { %39 = dma.hbm_to_vmem [thread:$0]  %s584_s1, 256, %s34_s22, [#allocation6], %s446_s9, %s446_s9, %s447_s10  }
  0x15   :  { %s348_s15 = scalar_lea.hbm %s583_s0, 128 }
  0x16   :  { %p349_p8 = scmp.ne.s32.totalorder %s583_s0, %s348_s15  ;;  %p352_p9 = scmp.lt.u32.totalorder %s348_s15, %s583_s0 }
  0x18   :  { %p354_p10 = pnand %p352_p9, %p349_p8 }
  0x1a   :  { %357 = shalt.err (!%p354_p10)
}
  0x1b   :  { %s358_s20 = scalar_lea.vmem %s488_s24, 128  ;;  %p363_p12 = scmp.lt.s32.totalorder %s488_s24, %s488_s24 }
  0x1c   :  { %p359_p11 = scmp.ne.s32.totalorder %s488_s24, %s358_s20  ;;  %p364_p13 = scmp.lt.s32.totalorder %s358_s20, %s358_s20 }
  0x1e   :  { %p365_p0 = por %p364_p13, %p363_p12 }
  0x20   :  { %p366_p1 = pnand %p365_p0, %p359_p11 }
  0x22   :  { %369 = shalt.err (!%p366_p1)
}
  0x23   :  { %27 = dma.hbm_to_vmem [thread:$0]  %s583_s0, 128, %s488_s24, [#allocation3], %s446_s9, %s446_s9, %s447_s10  }
  0x24   :  { %s448_s22 = smov [#allocation7]   ;;  %s370_s27 = scalar_lea.hbm %s585_s2, 256 }
  0x25   :  { %s45_s23 = sshll.u32 %s448_s22, 4  ;;  %p371_p2 = scmp.ne.s32.totalorder %s585_s2, %s370_s27  ;;  %s46_s23 = int_to_ptr.vmem [resolvable:$true] %s45_s23 }
  0x26   :  { %p374_p3 = scmp.lt.u32.totalorder %s370_s27, %s585_s2 }
  0x28   :  { %p376_p4 = pnand %p374_p3, %p371_p2 }
  0x2a   :  { %379 = shalt.err (!%p376_p4)
}
  0x2b   :  { %s380_s8 = scalar_lea.vmem %s46_s23, 256  ;;  %p385_p6 = scmp.lt.s32.totalorder %s46_s23, %s46_s23 }
  0x2c   :  { %p381_p5 = scmp.ne.s32.totalorder %s46_s23, %s380_s8  ;;  %p386_p7 = scmp.lt.s32.totalorder %s380_s8, %s380_s8 }
  0x2e   :  { %p387_p8 = por %p386_p7, %p385_p6 }
  0x30   :  { %p388_p9 = pnand %p387_p8, %p381_p5 }
  0x32   :  { %391 = shalt.err (!%p388_p9)
}
  0x33   :  { %51 = dma.hbm_to_vmem [thread:$0]  %s585_s2, 256, %s46_s23, [#allocation6], %s446_s9, %s446_s9, %s447_s10  }
  0x34   :  { %436 = dma.done.wait [#allocation3], 128  }
  0x35   :  { %437 = vsyncadd [#allocation3], 4294967168 }
  0x36   :  { %438 = dma.done.wait [#allocation6], 512  }
  0x37   :  { %439 = vsyncadd [#allocation6], 4294966784  ;;  %v449_v0 = vmov 0.0   ;;  %vm450_vm0 = vmmov 0   ;;  %v321_v1 = vld [vmem:[#allocation5] sm:$0xff]   ;;  %v322_v2 = vld [vmem:[#allocation7] sm:$0xff]  }
  0x38   :  { %296 = vmatprep.subr.bf16.mxu0 %v449_v0  ;;  %304 = vmatprep.subr.bf16.mxu1 %v449_v0  ;;  %v323_v3 = vld [vmem:[#allocation5 + $0x8] sm:$0xff]   ;;  %v324_v4 = vld [vmem:[#allocation7 + $0x8] sm:$0xff]   ;;  %vm90_vm1 = vcmask 261120   ;;  %s451_s14 = smov [#allocation8]   ;;  %s452_s16 = smov [#allocation9]  }
  0x39   :  { %300 = vmatprep.mubr.msk.bf16.mxu0 %vm450_vm0, %v449_v0  ;;  %308 = vmatprep.mubr.msk.bf16.mxu1 %vm450_vm0, %v449_v0  ;;  %v325_v5 = vld [vmem:[#allocation2] sm:$0xff]   ;;  %s234_s15 = sshll.u32 %s451_s14, 4  ;;  %s246_s17 = sshll.u32 %s452_s16, 4  ;;  %s235_s15 = int_to_ptr.vmem [resolvable:$true] %s234_s15  ;;  %s546_s17 = int_to_ptr.vmem [resolvable:$true] %s246_s17 }
  0x3a   :  { %297 = vmatpush3.bf16.msra.mxu0 %v321_v1  ;;  %305 = vmatpush3.bf16.msra.mxu1 %v322_v2  ;;  %v267_v6 = vld [vmem:[%s586_s3] ss:$0 sm:$0xff]  ;;  %s392_s3 = scalar_lea.vmem %s235_s15, 128  ;;  %p397_p11 = scmp.lt.s32.totalorder %s235_s15, %s235_s15 }
  0x3b   :  { %298 = vmatprep.subr.bf16.mxu0 %v449_v0  ;;  %306 = vmatprep.subr.bf16.mxu1 %v449_v0  ;;  %v273_v8 = vld [vmem:[%s587_s4] ss:$0 sm:$0xff]  ;;  %p393_p10 = scmp.ne.s32.totalorder %s235_s15, %s392_s3  ;;  %p398_p12 = scmp.lt.s32.totalorder %s392_s3, %s392_s3 }
  0x3d   :  { %p399_p13 = por %p398_p12, %p397_p11 }
  0x3e   :  { %299 = vmatpush3.bf16.msra.mxu0 %v323_v3  ;;  %307 = vmatpush3.bf16.msra.mxu1 %v324_v4 }
  0x3f   :  { %p400_p0 = pnand %p399_p13, %p393_p10 }
  0x41   :  { %301 = vmatmul.mubr.msk.bf16.vlgmr.msra.gmra.mrb[0].mxu0 %vm90_vm1, %v325_v5  ;;  %309 = vmatmul.mubr.msk.bf16.vlgmr.msra.gmra.mrb[0].mxu1 %vm90_vm1, %v325_v5 }
 0x114   :  { %v128_v7 = vpop.f32.mrb[0].mxu0  ;;  %v204_v9 = vpop.f32.mrb[0].mxu1 }
 0x115   :  { %v302_v10 = vpop.f32.mrb[1].mxu0  ;;  %v310_v11 = vpop.f32.mrb[1].mxu1  ;;  %v141_v13 = vadd.f32 %v267_v6, %v128_v7  ;;  %v217_v17 = vadd.f32 %v273_v8, %v204_v9 }
 0x116   :  { %v131_v12 = vpop.f32.mrb[2].mxu0  ;;  %v207_v15 = vpop.f32.mrb[2].mxu1 }
 0x117   :  { %v142_v14 = vadd.f32 %v267_v6, %v131_v12  ;;  %v303_v16 = vpop.f32.mrb[3].mxu0  ;;  %v218_v18 = vadd.f32 %v273_v8, %v207_v15  ;;  %v311_v19 = vpop.f32.mrb[3].mxu1 }
 0x119   :  { %v283_v20 = vpack.c.bf16 %v142_v14, %v141_v13  ;;  %v288_v21 = vpack.c.bf16 %v218_v18, %v217_v17 }
 0x11b   :  { %284 = vst [vmem:[#allocation8] sm:$0xff] %v283_v20   ;;  %289 = vst [vmem:[#allocation9] sm:$0xff] %v288_v21  }
 0x11c   :  { %403 = shalt.err (!%p400_p0)
}
 0x11d   :  { %s404_s19 = scalar_lea.hbm %s588_s5, 128 }
 0x11e   :  { %p405_p1 = scmp.ne.s32.totalorder %s588_s5, %s404_s19  ;;  %p408_p2 = scmp.lt.u32.totalorder %s404_s19, %s588_s5 }
 0x120   :  { %p410_p3 = pnand %p408_p2, %p405_p1 }
 0x122   :  { %413 = shalt.err (!%p410_p3)
}
 0x123   :  { %240 = dma.vmem_to_hbm [thread:$0]  %s235_s15, 128, %s588_s5, [#allocation4], %s446_s9, %s446_s9, %s447_s10  }
 0x124   :  { %s414_s26 = scalar_lea.vmem %s546_s17, 128  ;;  %p419_p5 = scmp.lt.s32.totalorder %s546_s17, %s546_s17 }
 0x125   :  { %p415_p4 = scmp.ne.s32.totalorder %s546_s17, %s414_s26  ;;  %p420_p6 = scmp.lt.s32.totalorder %s414_s26, %s414_s26 }
 0x127   :  { %p421_p7 = por %p420_p6, %p419_p5 }
 0x129   :  { %p422_p8 = pnand %p421_p7, %p415_p4 }
 0x12b   :  { %425 = shalt.err (!%p422_p8)
}
 0x12c   :  { %s426_s29 = scalar_lea.hbm %s589_s6, 128 }
 0x12d   :  { %p427_p9 = scmp.ne.s32.totalorder %s589_s6, %s426_s29  ;;  %p430_p10 = scmp.lt.u32.totalorder %s426_s29, %s589_s6 }
 0x12f   :  { %p432_p11 = pnand %p430_p10, %p427_p9 }
 0x131   :  { %435 = shalt.err (!%p432_p11)
}
 0x132   :  { %252 = dma.vmem_to_hbm [thread:$0]  %s546_s17, 128, %s589_s6, [#allocation10], %s446_s9, %s446_s9, %s447_s10  }
 0x133   :  { %440 = dma.done.wait [#allocation4], 128  }
 0x134   :  { %441 = vsyncadd [#allocation4], 4294967168 }
 0x135   :  { %442 = dma.done.wait [#allocation10], 128  }
 0x136   :  { %443 = vsyncadd [#allocation10], 4294967168 }
 0x137   :  { %259 = vsyncpa [#allocation3], 1 }
 0x138   :  { %260 = vsyncpa [#allocation6], 1 }
 0x139   :  { %261 = vsyncpa [#allocation4], 1 }
 0x13a   :  { %262 = vsyncpa [#allocation10], 1 }

</bundles_post_ra>
